<compile_context>
chip_gen: v7x
topology: tpu7x:2x2x1
jax: 0.10.0
libtpu: 0.0.40
codegen_flags: <defaults>
</compile_context>

<pallas_src>
import jax
import jax.numpy as jnp
from jax.experimental import pallas as pl
from jax.experimental.pallas import tpu as pltpu


def agfb_kernel(xf_ref, xt_ref, s_ref, w_ref, b_ref, o_ref):
    """One node tile of the AGFB forward (node axis on lanes).

    xf_ref: (B*T, N)            full input slab, X[b*T+i, n] = x[b, i, n] (resident)
    xt_ref: (1, B*T, TILE)      node tile of the same slab (identity/residual block)
    s_ref:  (1, N, 2*TILE)      stacked support columns [A^T | (2A^2-I)^T] for this tile
    w_ref:  (1, 3T, T, TILE)    fused per-node weights (graph conv + residual + F_Block)
    b_ref:  (1, T, TILE)        fused per-node bias
    o_ref:  (1, B*T, TILE)      output, o[0, b*T+o, l] = y[b, o, node_tile_start + l]
    """
    f32 = jnp.float32
    _, _, T, TILE = w_ref.shape
    BT = xf_ref.shape[0]
    B = BT // T

    # --- both non-identity Chebyshev supports with ONE MXU matmul ---------------
    # (B*T, N) @ (N, 2*TILE): lane dim is 2*node_tile (256 at production tile 128).
    G = jnp.dot(xf_ref[...], s_ref[0], preferred_element_type=f32)   # (BT, 2*TILE)

    # Chebyshev feature blocks, node (lane) axis last.
    g0 = xt_ref[0].reshape(B, T, TILE)          # k = 0 : identity support (residual)
    g1 = G[:, :TILE].reshape(B, T, TILE)        # k = 1 : A
    g2 = G[:, TILE:].reshape(B, T, TILE)        # k = 2 : 2A^2 - I

    # --- per-node contraction on the VPU ----------------------------------------
    # y[b, o, :] = bias[o, :] + sum_{k,i} g_k[b, i, :] * W[k*T+i, o, :]
    # 3T broadcast-FMAs over node-wide vregs; accumulator starts from the fused
    # bias (no separate broadcast+add pass at the end).
    w = w_ref[0]                                                     # (3T, T, TILE)
    acc = jnp.broadcast_to(b_ref[0][None, :, :], (B, T, TILE))
    for k, gk in enumerate((g0, g1, g2)):
        base = k * T
        for i in range(T):
            acc = acc + gk[:, i, None, :] * w[base + i][None]        # (B,1,TILE)*(1,T,TILE)

    o_ref[...] = acc.reshape(1, BT, TILE)


def agfb_prepare(E, WpF, bp, wr, wi, COS, NSIN, IC, IS, node_tile, mxu_dtype):
    """Fold every batch-invariant piece of AGFB into three node-tiled tensors."""
    f32 = jnp.float32
    N = E.shape[0]
    T = bp.shape[1]
    K = 3
    nt = N // node_tile
    assert nt * node_tile == N

    # AdpGCN adaptive adjacency; supports stored transposed (node-on-lanes layout).
    A = jax.nn.softmax(jnp.maximum(E @ E.T, 0.0), axis=1)
    S1 = A.T                                                            # (N, N)
    S2 = (2.0 * A @ A - jnp.eye(N, dtype=f32)).T                        # (N, N)

    # Per-node weights / bias from the embedding pools.
    W = (E @ WpF).reshape(N, K * T, T)                                  # (N, 3T, T), c = k*T + i
    bias = E @ bp                                                       # (N, T)

    # Fold the residual (x = adgcn(x) + x): identity on the k = 0 (I-support) block.
    W = W.at[:, :T, :].add(jnp.eye(T, dtype=f32))

    # Fold the F_Block: y[n] = irfft(rfft(h[n]) * (wr[n] + i wi[n])) = h[n] @ M[n].
    P = wr[:, :, None] * IC[None] + wi[:, :, None] * IS[None]           # (N, F, T)
    Q = wr[:, :, None] * IS[None] - wi[:, :, None] * IC[None]           # (N, F, T)
    M = (jnp.einsum('tf,nfo->nto', COS, P)
         + jnp.einsum('tf,nfo->nto', NSIN, Q))                          # (N, T, T)

    # Node axis LAST (lanes), then pre-split into tiles (leading tile index) so
    # every BlockSpec block equals the full trailing dims (no (8,128) issues).
    Wf = jnp.einsum('nct,nto->con', W, M)                               # (3T, T, N)
    bf = jnp.einsum('nt,nto->on', bias, M)                              # (T, N)

    def split_last(a):
        a = a.reshape(a.shape[:-1] + (nt, node_tile))
        return jnp.moveaxis(a, -2, 0)                                   # (nt, ..., tile)

    S_cat = jnp.concatenate([split_last(S1), split_last(S2)], axis=-1)  # (nt, N, 2*tile)
    W_t = split_last(Wf)                                                # (nt, 3T, T, tile)
    b_t = split_last(bf)                                                # (nt, T, tile)
    return S_cat.astype(mxu_dtype), W_t, b_t


def agfb_forward(x4, E, WpF, bp, wr, wi, COS, NSIN, IC, IS, *,
                 node_tile=None, mxu_dtype=jnp.float32):
    """x4: (B, 1, T, S) -> (B, 1, T, S)."""
    B, C, T, N = x4.shape
    assert C == 1
    if node_tile is None:
        node_tile = min(N, 128)
    assert N % node_tile == 0
    nt = N // node_tile
    BT = B * T

    S_cat, W_t, b_t = agfb_prepare(E, WpF, bp, wr, wi, COS, NSIN, IC, IS,
                                   node_tile, mxu_dtype)

    # Node-on-lanes input slab: X[b*T + i, n] = x[b, i, n] (pure reshape, no transpose).
    X_full = x4[:, 0].astype(jnp.float32).reshape(BT, N)
    # Same slab, node axis pre-split into tiles, for the identity/residual block.
    X_tiled = jnp.moveaxis(X_full.reshape(BT, nt, node_tile), 1, 0)      # (nt, BT, tile)

    out = pl.pallas_call(
        agfb_kernel,
        out_shape=jax.ShapeDtypeStruct((nt, BT, node_tile), jnp.float32),
        grid=(nt,),
        in_specs=[
            pl.BlockSpec((BT, N), lambda j: (0, 0)),                     # X resident
            pl.BlockSpec((1, BT, node_tile), lambda j: (j, 0, 0)),       # X node tile
            pl.BlockSpec((1, N, 2 * node_tile), lambda j: (j, 0, 0)),    # support cols
            pl.BlockSpec((1, 3 * T, T, node_tile), lambda j: (j, 0, 0, 0)),
            pl.BlockSpec((1, T, node_tile), lambda j: (j, 0, 0)),
        ],
        out_specs=pl.BlockSpec((1, BT, node_tile), lambda j: (j, 0, 0)),
        compiler_params=pltpu.CompilerParams(
            dimension_semantics=("parallel",)),
        # TODO(synk): at production tiles raise vmem_limit_bytes here (scoped
        # default is 32 MiB; budget ~48 MiB double-buffered on v7x's 64 MiB VMEM).
    )(X_full.astype(mxu_dtype), X_tiled, S_cat, W_t, b_t)

    # (nt, B*T, tile) -> (B*T, N) -> (B, 1, T, N)
    y = jnp.moveaxis(out, 0, 1).reshape(BT, N).reshape(B, T, N)
    return y[:, None]


def agfb_reference(x4, E, WpF, bp, wr, wi, COS, NSIN, IC, IS):
    """Pure-JAX, unfused reference of the same forward (for checking)."""
    B, _, T, N = x4.shape
    K = 3
    x = x4[:, 0].astype(jnp.float32)                              # (B, T, N)
    A = jax.nn.softmax(jnp.maximum(E @ E.T, 0.0), axis=1)
    eye = jnp.eye(N, dtype=jnp.float32)
    supports = jnp.stack([eye, A, 2.0 * A @ A - eye])             # (K, N, N)
    xn = jnp.swapaxes(x, 1, 2)                                    # (B, N, T)
    xg = jnp.einsum('knm,bmt->bknt', supports, xn)                # (B, K, N, T)
    W = (E @ WpF).reshape(N, K, T, T)
    bias = E @ bp
    outn = jnp.einsum('bkni,nkio->bno', xg, W) + bias
    hn = outn + xn
    Hr = hn @ COS
    Hi = hn @ NSIN
    Yr = Hr * wr - Hi * wi
    Yi = Hr * wi + Hi * wr
    yn = Yr @ IC + Yi @ IS
    return jnp.swapaxes(yn, 1, 2)[:, None]


if __name__ == "__main__":
    # small shapes: batch=2, n_his(T)=8, n_vertex(S)=16, emb_dim=8, cheb_k=3
    B, T, N, D, K = 2, 8, 16, 8, 3
    F = T // 2 + 1

    key = jax.random.PRNGKey(0)
    kx, ke, kw, kb, kr, ki = jax.random.split(key, 6)
    x4 = jax.random.normal(kx, (B, 1, T, N), dtype=jnp.float32)

    # AdpGCN parameters
    E = jax.random.normal(ke, (N, D), dtype=jnp.float32) * 0.5                 # node embeddings
    Wp = jax.random.normal(kw, (D, K, T, T), dtype=jnp.float32) / jnp.sqrt(K * T * 1.0)
    WpF = Wp.reshape(D, K * T * T)                                             # weights_pool (flat)
    bp = jax.random.normal(kb, (D, T), dtype=jnp.float32) * 0.1                # bias_pool

    # F_Block complex filter (per node, per frequency), stored as real/imag (N, F)
    wr = 1.0 + 0.2 * jax.random.normal(kr, (N, F), dtype=jnp.float32)
    wi = 0.2 * jax.random.normal(ki, (N, F), dtype=jnp.float32)

    # DFT / inverse-DFT bases (constants)
    t = jnp.arange(T, dtype=jnp.float32)[:, None]
    f = jnp.arange(F, dtype=jnp.float32)[None, :]
    ang = 2.0 * jnp.pi * t * f / T                                             # (T, F)
    COS = jnp.cos(ang)
    NSIN = -jnp.sin(ang)
    if T % 2 == 0:
        nyq = jnp.arange(F) == T // 2
    else:
        nyq = jnp.zeros((F,), dtype=bool)
    mult = jnp.where((jnp.arange(F) == 0) | nyq, 1.0, 2.0).astype(jnp.float32)
    IC = (mult[:, None] * jnp.cos(ang).T) / T                                  # (F, T)
    IS = (-mult[:, None] * jnp.sin(ang).T) / T

    # node_tile=8 exercises a real multi-step "parallel" node grid at toy size;
    # keep f32 MXU operands here so the check against the reference stays tight.
    out = agfb_forward(x4, E, WpF, bp, wr, wi, COS, NSIN, IC, IS,
                       node_tile=8, mxu_dtype=jnp.float32)
    out = jax.block_until_ready(out)

    ref = agfb_reference(x4, E, WpF, bp, wr, wi, COS, NSIN, IC, IS)
    assert out.shape == (B, 1, T, N), out.shape
    assert bool(jnp.allclose(out, ref, rtol=1e-3, atol=1e-3)), (
        float(jnp.max(jnp.abs(out - ref))))

    print("KERNEL_OK")
</pallas_src>

<mosaic_0001>
module attributes {stable_mosaic.version = 11 : i64} {
  func.func @agfb_kernel(%arg0: i32, %arg1: memref<16x16xf32, #tpu.memory_space<vmem>>, %arg2: memref<1x16x8xf32, #tpu.memory_space<vmem>>, %arg3: memref<1x16x16xf32, #tpu.memory_space<vmem>>, %arg4: memref<1x24x8x8xf32, #tpu.memory_space<vmem>>, %arg5: memref<1x8x8xf32, #tpu.memory_space<vmem>>, %arg6: memref<1x16x8xf32, #tpu.memory_space<vmem>>) attributes {dimension_semantics = [#tpu.dimension_semantics<parallel>], iteration_bounds = array<i64: 2>, scalar_prefetch = 0 : i64, scratch_operands = 0 : i64, tpu.core_type = #tpu.core_type<tc>, window_params = [{pipeline_mode = #tpu.pipeline_mode<synchronous>, transform_indices = @transform_0, window_bounds = array<i64: 16, 16>}, {transform_indices = @transform_1, window_bounds = array<i64: 1, 16, 8>}, {transform_indices = @transform_2, window_bounds = array<i64: 1, 16, 16>}, {transform_indices = @transform_3, window_bounds = array<i64: 1, 24, 8, 8>}, {transform_indices = @transform_4, window_bounds = array<i64: 1, 8, 8>}, {transform_indices = @transform_5, window_bounds = array<i64: 1, 16, 8>}]} {
    %c0 = arith.constant 0 : index
    %c0_0 = arith.constant 0 : index
    %0 = vector.load %arg1[%c0, %c0_0] : memref<16x16xf32, #tpu.memory_space<vmem>>, vector<16x16xf32>
    %c0_1 = arith.constant 0 : index
    %c0_2 = arith.constant 0 : index
    %c0_3 = arith.constant 0 : index
    %1 = vector.load %arg3[%c0_1, %c0_2, %c0_3] : memref<1x16x16xf32, #tpu.memory_space<vmem>>, vector<1x16x16xf32>
    %2 = vector.shape_cast %1 : vector<1x16x16xf32> to vector<16x16xf32>
    %cst = arith.constant dense<0.000000e+00> : vector<16x16xf32>
    %3 = tpu.matmul %0, %2, %cst {dimension_numbers = #tpu.dot_dimension_numbers<[1], [0], [0], [1], [0, 0, 1, 1], [], []>} : vector<16x16xf32>, vector<16x16xf32>, vector<16x16xf32> -> vector<16x16xf32>
    %c0_4 = arith.constant 0 : index
    %c0_5 = arith.constant 0 : index
    %c0_6 = arith.constant 0 : index
    %4 = vector.load %arg2[%c0_4, %c0_5, %c0_6] : memref<1x16x8xf32, #tpu.memory_space<vmem>>, vector<1x16x8xf32>
    %5 = vector.shape_cast %4 : vector<1x16x8xf32> to vector<16x8xf32>
    %6 = vector.shape_cast %5 : vector<16x8xf32> to vector<2x8x8xf32>
    %7 = vector.extract_strided_slice %3 {offsets = [0, 0], sizes = [16, 8], strides = [1, 1]} : vector<16x16xf32> to vector<16x8xf32>
    %8 = vector.shape_cast %7 : vector<16x8xf32> to vector<2x8x8xf32>
    %9 = vector.extract_strided_slice %3 {offsets = [0, 8], sizes = [16, 8], strides = [1, 1]} : vector<16x16xf32> to vector<16x8xf32>
    %10 = vector.shape_cast %9 : vector<16x8xf32> to vector<2x8x8xf32>
    %c0_7 = arith.constant 0 : index
    %c0_8 = arith.constant 0 : index
    %c0_9 = arith.constant 0 : index
    %c0_10 = arith.constant 0 : index
    %11 = vector.load %arg4[%c0_7, %c0_8, %c0_9, %c0_10] : memref<1x24x8x8xf32, #tpu.memory_space<vmem>>, vector<1x24x8x8xf32>
    %12 = vector.shape_cast %11 : vector<1x24x8x8xf32> to vector<24x8x8xf32>
    %c0_11 = arith.constant 0 : index
    %c0_12 = arith.constant 0 : index
    %c0_13 = arith.constant 0 : index
    %13 = vector.load %arg5[%c0_11, %c0_12, %c0_13] : memref<1x8x8xf32, #tpu.memory_space<vmem>>, vector<1x8x8xf32>
    %14 = vector.shape_cast %13 : vector<1x8x8xf32> to vector<8x8xf32>
    %15 = vector.shape_cast %14 : vector<8x8xf32> to vector<1x8x8xf32>
    %16 = vector.shape_cast %15 : vector<1x8x8xf32> to vector<1x8x8xf32>
    %17 = vector.broadcast %16 : vector<1x8x8xf32> to vector<2x8x8xf32>
    %18 = vector.extract_strided_slice %6 {offsets = [0, 0, 0], sizes = [2, 1, 8], strides = [1, 1, 1]} : vector<2x8x8xf32> to vector<2x1x8xf32>
    %19 = vector.shape_cast %18 : vector<2x1x8xf32> to vector<2x8xf32>
    %20 = vector.shape_cast %19 : vector<2x8xf32> to vector<2x1x8xf32>
    %21 = vector.extract_strided_slice %12 {offsets = [0, 0, 0], sizes = [1, 8, 8], strides = [1, 1, 1]} : vector<24x8x8xf32> to vector<1x8x8xf32>
    %22 = vector.shape_cast %21 : vector<1x8x8xf32> to vector<8x8xf32>
    %23 = vector.shape_cast %22 : vector<8x8xf32> to vector<1x8x8xf32>
    %24 = vector.broadcast %20 : vector<2x1x8xf32> to vector<2x8x8xf32>
    %25 = vector.broadcast %23 : vector<1x8x8xf32> to vector<2x8x8xf32>
    %26 = arith.mulf %24, %25 : vector<2x8x8xf32>
    %27 = arith.addf %17, %26 : vector<2x8x8xf32>
    %28 = vector.extract_strided_slice %6 {offsets = [0, 1, 0], sizes = [2, 1, 8], strides = [1, 1, 1]} : vector<2x8x8xf32> to vector<2x1x8xf32>
    %29 = vector.shape_cast %28 : vector<2x1x8xf32> to vector<2x8xf32>
    %30 = vector.shape_cast %29 : vector<2x8xf32> to vector<2x1x8xf32>
    %31 = vector.extract_strided_slice %12 {offsets = [1, 0, 0], sizes = [1, 8, 8], strides = [1, 1, 1]} : vector<24x8x8xf32> to vector<1x8x8xf32>
    %32 = vector.shape_cast %31 : vector<1x8x8xf32> to vector<8x8xf32>
    %33 = vector.shape_cast %32 : vector<8x8xf32> to vector<1x8x8xf32>
    %34 = vector.broadcast %30 : vector<2x1x8xf32> to vector<2x8x8xf32>
    %35 = vector.broadcast %33 : vector<1x8x8xf32> to vector<2x8x8xf32>
    %36 = arith.mulf %34, %35 : vector<2x8x8xf32>
    %37 = arith.addf %27, %36 : vector<2x8x8xf32>
    %38 = vector.extract_strided_slice %6 {offsets = [0, 2, 0], sizes = [2, 1, 8], strides = [1, 1, 1]} : vector<2x8x8xf32> to vector<2x1x8xf32>
    %39 = vector.shape_cast %38 : vector<2x1x8xf32> to vector<2x8xf32>
    %40 = vector.shape_cast %39 : vector<2x8xf32> to vector<2x1x8xf32>
    %41 = vector.extract_strided_slice %12 {offsets = [2, 0, 0], sizes = [1, 8, 8], strides = [1, 1, 1]} : vector<24x8x8xf32> to vector<1x8x8xf32>
    %42 = vector.shape_cast %41 : vector<1x8x8xf32> to vector<8x8xf32>
    %43 = vector.shape_cast %42 : vector<8x8xf32> to vector<1x8x8xf32>
    %44 = vector.broadcast %40 : vector<2x1x8xf32> to vector<2x8x8xf32>
    %45 = vector.broadcast %43 : vector<1x8x8xf32> to vector<2x8x8xf32>
    %46 = arith.mulf %44, %45 : vector<2x8x8xf32>
    %47 = arith.addf %37, %46 : vector<2x8x8xf32>
    %48 = vector.extract_strided_slice %6 {offsets = [0, 3, 0], sizes = [2, 1, 8], strides = [1, 1, 1]} : vector<2x8x8xf32> to vector<2x1x8xf32>
    %49 = vector.shape_cast %48 : vector<2x1x8xf32> to vector<2x8xf32>
    %50 = vector.shape_cast %49 : vector<2x8xf32> to vector<2x1x8xf32>
    %51 = vector.extract_strided_slice %12 {offsets = [3, 0, 0], sizes = [1, 8, 8], strides = [1, 1, 1]} : vector<24x8x8xf32> to vector<1x8x8xf32>
    %52 = vector.shape_cast %51 : vector<1x8x8xf32> to vector<8x8xf32>
    %53 = vector.shape_cast %52 : vector<8x8xf32> to vector<1x8x8xf32>
    %54 = vector.broadcast %50 : vector<2x1x8xf32> to vector<2x8x8xf32>
    %55 = vector.broadcast %53 : vector<1x8x8xf32> to vector<2x8x8xf32>
    %56 = arith.mulf %54, %55 : vector<2x8x8xf32>
    %57 = arith.addf %47, %56 : vector<2x8x8xf32>
    %58 = vector.extract_strided_slice %6 {offsets = [0, 4, 0], sizes = [2, 1, 8], strides = [1, 1, 1]} : vector<2x8x8xf32> to vector<2x1x8xf32>
    %59 = vector.shape_cast %58 : vector<2x1x8xf32> to vector<2x8xf32>
    %60 = vector.shape_cast %59 : vector<2x8xf32> to vector<2x1x8xf32>
    %61 = vector.extract_strided_slice %12 {offsets = [4, 0, 0], sizes = [1, 8, 8], strides = [1, 1, 1]} : vector<24x8x8xf32> to vector<1x8x8xf32>
    %62 = vector.shape_cast %61 : vector<1x8x8xf32> to vector<8x8xf32>
    %63 = vector.shape_cast %62 : vector<8x8xf32> to vector<1x8x8xf32>
    %64 = vector.broadcast %60 : vector<2x1x8xf32> to vector<2x8x8xf32>
    %65 = vector.broadcast %63 : vector<1x8x8xf32> to vector<2x8x8xf32>
    %66 = arith.mulf %64, %65 : vector<2x8x8xf32>
    %67 = arith.addf %57, %66 : vector<2x8x8xf32>
    %68 = vector.extract_strided_slice %6 {offsets = [0, 5, 0], sizes = [2, 1, 8], strides = [1, 1, 1]} : vector<2x8x8xf32> to vector<2x1x8xf32>
    %69 = vector.shape_cast %68 : vector<2x1x8xf32> to vector<2x8xf32>
    %70 = vector.shape_cast %69 : vector<2x8xf32> to vector<2x1x8xf32>
    %71 = vector.extract_strided_slice %12 {offsets = [5, 0, 0], sizes = [1, 8, 8], strides = [1, 1, 1]} : vector<24x8x8xf32> to vector<1x8x8xf32>
    %72 = vector.shape_cast %71 : vector<1x8x8xf32> to vector<8x8xf32>
    %73 = vector.shape_cast %72 : vector<8x8xf32> to vector<1x8x8xf32>
    %74 = vector.broadcast %70 : vector<2x1x8xf32> to vector<2x8x8xf32>
    %75 = vector.broadcast %73 : vector<1x8x8xf32> to vector<2x8x8xf32>
    %76 = arith.mulf %74, %75 : vector<2x8x8xf32>
    %77 = arith.addf %67, %76 : vector<2x8x8xf32>
    %78 = vector.extract_strided_slice %6 {offsets = [0, 6, 0], sizes = [2, 1, 8], strides = [1, 1, 1]} : vector<2x8x8xf32> to vector<2x1x8xf32>
    %79 = vector.shape_cast %78 : vector<2x1x8xf32> to vector<2x8xf32>
    %80 = vector.shape_cast %79 : vector<2x8xf32> to vector<2x1x8xf32>
    %81 = vector.extract_strided_slice %12 {offsets = [6, 0, 0], sizes = [1, 8, 8], strides = [1, 1, 1]} : vector<24x8x8xf32> to vector<1x8x8xf32>
    %82 = vector.shape_cast %81 : vector<1x8x8xf32> to vector<8x8xf32>
    %83 = vector.shape_cast %82 : vector<8x8xf32> to vector<1x8x8xf32>
    %84 = vector.broadcast %80 : vector<2x1x8xf32> to vector<2x8x8xf32>
    %85 = vector.broadcast %83 : vector<1x8x8xf32> to vector<2x8x8xf32>
    %86 = arith.mulf %84, %85 : vector<2x8x8xf32>
    %87 = arith.addf %77, %86 : vector<2x8x8xf32>
    %88 = vector.extract_strided_slice %6 {offsets = [0, 7, 0], sizes = [2, 1, 8], strides = [1, 1, 1]} : vector<2x8x8xf32> to vector<2x1x8xf32>
    %89 = vector.shape_cast %88 : vector<2x1x8xf32> to vector<2x8xf32>
    %90 = vector.shape_cast %89 : vector<2x8xf32> to vector<2x1x8xf32>
    %91 = vector.extract_strided_slice %12 {offsets = [7, 0, 0], sizes = [1, 8, 8], strides = [1, 1, 1]} : vector<24x8x8xf32> to vector<1x8x8xf32>
    %92 = vector.shape_cast %91 : vector<1x8x8xf32> to vector<8x8xf32>
    %93 = vector.shape_cast %92 : vector<8x8xf32> to vector<1x8x8xf32>
    %94 = vector.broadcast %90 : vector<2x1x8xf32> to vector<2x8x8xf32>
    %95 = vector.broadcast %93 : vector<1x8x8xf32> to vector<2x8x8xf32>
    %96 = arith.mulf %94, %95 : vector<2x8x8xf32>
    %97 = arith.addf %87, %96 : vector<2x8x8xf32>
    %98 = vector.extract_strided_slice %8 {offsets = [0, 0, 0], sizes = [2, 1, 8], strides = [1, 1, 1]} : vector<2x8x8xf32> to vector<2x1x8xf32>
    %99 = vector.shape_cast %98 : vector<2x1x8xf32> to vector<2x8xf32>
    %100 = vector.shape_cast %99 : vector<2x8xf32> to vector<2x1x8xf32>
    %101 = vector.extract_strided_slice %12 {offsets = [8, 0, 0], sizes = [1, 8, 8], strides = [1, 1, 1]} : vector<24x8x8xf32> to vector<1x8x8xf32>
    %102 = vector.shape_cast %101 : vector<1x8x8xf32> to vector<8x8xf32>
    %103 = vector.shape_cast %102 : vector<8x8xf32> to vector<1x8x8xf32>
    %104 = vector.broadcast %100 : vector<2x1x8xf32> to vector<2x8x8xf32>
    %105 = vector.broadcast %103 : vector<1x8x8xf32> to vector<2x8x8xf32>
    %106 = arith.mulf %104, %105 : vector<2x8x8xf32>
    %107 = arith.addf %97, %106 : vector<2x8x8xf32>
    %108 = vector.extract_strided_slice %8 {offsets = [0, 1, 0], sizes = [2, 1, 8], strides = [1, 1, 1]} : vector<2x8x8xf32> to vector<2x1x8xf32>
    %109 = vector.shape_cast %108 : vector<2x1x8xf32> to vector<2x8xf32>
    %110 = vector.shape_cast %109 : vector<2x8xf32> to vector<2x1x8xf32>
    %111 = vector.extract_strided_slice %12 {offsets = [9, 0, 0], sizes = [1, 8, 8], strides = [1, 1, 1]} : vector<24x8x8xf32> to vector<1x8x8xf32>
    %112 = vector.shape_cast %111 : vector<1x8x8xf32> to vector<8x8xf32>
    %113 = vector.shape_cast %112 : vector<8x8xf32> to vector<1x8x8xf32>
    %114 = vector.broadcast %110 : vector<2x1x8xf32> to vector<2x8x8xf32>
    %115 = vector.broadcast %113 : vector<1x8x8xf32> to vector<2x8x8xf32>
    %116 = arith.mulf %114, %115 : vector<2x8x8xf32>
    %117 = arith.addf %107, %116 : vector<2x8x8xf32>
    %118 = vector.extract_strided_slice %8 {offsets = [0, 2, 0], sizes = [2, 1, 8], strides = [1, 1, 1]} : vector<2x8x8xf32> to vector<2x1x8xf32>
    %119 = vector.shape_cast %118 : vector<2x1x8xf32> to vector<2x8xf32>
    %120 = vector.shape_cast %119 : vector<2x8xf32> to vector<2x1x8xf32>
    %121 = vector.extract_strided_slice %12 {offsets = [10, 0, 0], sizes = [1, 8, 8], strides = [1, 1, 1]} : vector<24x8x8xf32> to vector<1x8x8xf32>
    %122 = vector.shape_cast %121 : vector<1x8x8xf32> to vector<8x8xf32>
    %123 = vector.shape_cast %122 : vector<8x8xf32> to vector<1x8x8xf32>
    %124 = vector.broadcast %120 : vector<2x1x8xf32> to vector<2x8x8xf32>
    %125 = vector.broadcast %123 : vector<1x8x8xf32> to vector<2x8x8xf32>
    %126 = arith.mulf %124, %125 : vector<2x8x8xf32>
    %127 = arith.addf %117, %126 : vector<2x8x8xf32>
    %128 = vector.extract_strided_slice %8 {offsets = [0, 3, 0], sizes = [2, 1, 8], strides = [1, 1, 1]} : vector<2x8x8xf32> to vector<2x1x8xf32>
    %129 = vector.shape_cast %128 : vector<2x1x8xf32> to vector<2x8xf32>
    %130 = vector.shape_cast %129 : vector<2x8xf32> to vector<2x1x8xf32>
    %131 = vector.extract_strided_slice %12 {offsets = [11, 0, 0], sizes = [1, 8, 8], strides = [1, 1, 1]} : vector<24x8x8xf32> to vector<1x8x8xf32>
    %132 = vector.shape_cast %131 : vector<1x8x8xf32> to vector<8x8xf32>
    %133 = vector.shape_cast %132 : vector<8x8xf32> to vector<1x8x8xf32>
    %134 = vector.broadcast %130 : vector<2x1x8xf32> to vector<2x8x8xf32>
    %135 = vector.broadcast %133 : vector<1x8x8xf32> to vector<2x8x8xf32>
    %136 = arith.mulf %134, %135 : vector<2x8x8xf32>
    %137 = arith.addf %127, %136 : vector<2x8x8xf32>
    %138 = vector.extract_strided_slice %8 {offsets = [0, 4, 0], sizes = [2, 1, 8], strides = [1, 1, 1]} : vector<2x8x8xf32> to vector<2x1x8xf32>
    %139 = vector.shape_cast %138 : vector<2x1x8xf32> to vector<2x8xf32>
    %140 = vector.shape_cast %139 : vector<2x8xf32> to vector<2x1x8xf32>
    %141 = vector.extract_strided_slice %12 {offsets = [12, 0, 0], sizes = [1, 8, 8], strides = [1, 1, 1]} : vector<24x8x8xf32> to vector<1x8x8xf32>
    %142 = vector.shape_cast %141 : vector<1x8x8xf32> to vector<8x8xf32>
    %143 = vector.shape_cast %142 : vector<8x8xf32> to vector<1x8x8xf32>
    %144 = vector.broadcast %140 : vector<2x1x8xf32> to vector<2x8x8xf32>
    %145 = vector.broadcast %143 : vector<1x8x8xf32> to vector<2x8x8xf32>
    %146 = arith.mulf %144, %145 : vector<2x8x8xf32>
    %147 = arith.addf %137, %146 : vector<2x8x8xf32>
    %148 = vector.extract_strided_slice %8 {offsets = [0, 5, 0], sizes = [2, 1, 8], strides = [1, 1, 1]} : vector<2x8x8xf32> to vector<2x1x8xf32>
    %149 = vector.shape_cast %148 : vector<2x1x8xf32> to vector<2x8xf32>
    %150 = vector.shape_cast %149 : vector<2x8xf32> to vector<2x1x8xf32>
    %151 = vector.extract_strided_slice %12 {offsets = [13, 0, 0], sizes = [1, 8, 8], strides = [1, 1, 1]} : vector<24x8x8xf32> to vector<1x8x8xf32>
    %152 = vector.shape_cast %151 : vector<1x8x8xf32> to vector<8x8xf32>
    %153 = vector.shape_cast %152 : vector<8x8xf32> to vector<1x8x8xf32>
    %154 = vector.broadcast %150 : vector<2x1x8xf32> to vector<2x8x8xf32>
    %155 = vector.broadcast %153 : vector<1x8x8xf32> to vector<2x8x8xf32>
    %156 = arith.mulf %154, %155 : vector<2x8x8xf32>
    %157 = arith.addf %147, %156 : vector<2x8x8xf32>
    %158 = vector.extract_strided_slice %8 {offsets = [0, 6, 0], sizes = [2, 1, 8], strides = [1, 1, 1]} : vector<2x8x8xf32> to vector<2x1x8xf32>
    %159 = vector.shape_cast %158 : vector<2x1x8xf32> to vector<2x8xf32>
    %160 = vector.shape_cast %159 : vector<2x8xf32> to vector<2x1x8xf32>
    %161 = vector.extract_strided_slice %12 {offsets = [14, 0, 0], sizes = [1, 8, 8], strides = [1, 1, 1]} : vector<24x8x8xf32> to vector<1x8x8xf32>
    %162 = vector.shape_cast %161 : vector<1x8x8xf32> to vector<8x8xf32>
    %163 = vector.shape_cast %162 : vector<8x8xf32> to vector<1x8x8xf32>
    %164 = vector.broadcast %160 : vector<2x1x8xf32> to vector<2x8x8xf32>
    %165 = vector.broadcast %163 : vector<1x8x8xf32> to vector<2x8x8xf32>
    %166 = arith.mulf %164, %165 : vector<2x8x8xf32>
    %167 = arith.addf %157, %166 : vector<2x8x8xf32>
    %168 = vector.extract_strided_slice %8 {offsets = [0, 7, 0], sizes = [2, 1, 8], strides = [1, 1, 1]} : vector<2x8x8xf32> to vector<2x1x8xf32>
    %169 = vector.shape_cast %168 : vector<2x1x8xf32> to vector<2x8xf32>
    %170 = vector.shape_cast %169 : vector<2x8xf32> to vector<2x1x8xf32>
    %171 = vector.extract_strided_slice %12 {offsets = [15, 0, 0], sizes = [1, 8, 8], strides = [1, 1, 1]} : vector<24x8x8xf32> to vector<1x8x8xf32>
    %172 = vector.shape_cast %171 : vector<1x8x8xf32> to vector<8x8xf32>
    %173 = vector.shape_cast %172 : vector<8x8xf32> to vector<1x8x8xf32>
    %174 = vector.broadcast %170 : vector<2x1x8xf32> to vector<2x8x8xf32>
    %175 = vector.broadcast %173 : vector<1x8x8xf32> to vector<2x8x8xf32>
    %176 = arith.mulf %174, %175 : vector<2x8x8xf32>
    %177 = arith.addf %167, %176 : vector<2x8x8xf32>
    %178 = vector.extract_strided_slice %10 {offsets = [0, 0, 0], sizes = [2, 1, 8], strides = [1, 1, 1]} : vector<2x8x8xf32> to vector<2x1x8xf32>
    %179 = vector.shape_cast %178 : vector<2x1x8xf32> to vector<2x8xf32>
    %180 = vector.shape_cast %179 : vector<2x8xf32> to vector<2x1x8xf32>
    %181 = vector.extract_strided_slice %12 {offsets = [16, 0, 0], sizes = [1, 8, 8], strides = [1, 1, 1]} : vector<24x8x8xf32> to vector<1x8x8xf32>
    %182 = vector.shape_cast %181 : vector<1x8x8xf32> to vector<8x8xf32>
    %183 = vector.shape_cast %182 : vector<8x8xf32> to vector<1x8x8xf32>
    %184 = vector.broadcast %180 : vector<2x1x8xf32> to vector<2x8x8xf32>
    %185 = vector.broadcast %183 : vector<1x8x8xf32> to vector<2x8x8xf32>
    %186 = arith.mulf %184, %185 : vector<2x8x8xf32>
    %187 = arith.addf %177, %186 : vector<2x8x8xf32>
    %188 = vector.extract_strided_slice %10 {offsets = [0, 1, 0], sizes = [2, 1, 8], strides = [1, 1, 1]} : vector<2x8x8xf32> to vector<2x1x8xf32>
    %189 = vector.shape_cast %188 : vector<2x1x8xf32> to vector<2x8xf32>
    %190 = vector.shape_cast %189 : vector<2x8xf32> to vector<2x1x8xf32>
    %191 = vector.extract_strided_slice %12 {offsets = [17, 0, 0], sizes = [1, 8, 8], strides = [1, 1, 1]} : vector<24x8x8xf32> to vector<1x8x8xf32>
    %192 = vector.shape_cast %191 : vector<1x8x8xf32> to vector<8x8xf32>
    %193 = vector.shape_cast %192 : vector<8x8xf32> to vector<1x8x8xf32>
    %194 = vector.broadcast %190 : vector<2x1x8xf32> to vector<2x8x8xf32>
    %195 = vector.broadcast %193 : vector<1x8x8xf32> to vector<2x8x8xf32>
    %196 = arith.mulf %194, %195 : vector<2x8x8xf32>
    %197 = arith.addf %187, %196 : vector<2x8x8xf32>
    %198 = vector.extract_strided_slice %10 {offsets = [0, 2, 0], sizes = [2, 1, 8], strides = [1, 1, 1]} : vector<2x8x8xf32> to vector<2x1x8xf32>
    %199 = vector.shape_cast %198 : vector<2x1x8xf32> to vector<2x8xf32>
    %200 = vector.shape_cast %199 : vector<2x8xf32> to vector<2x1x8xf32>
    %201 = vector.extract_strided_slice %12 {offsets = [18, 0, 0], sizes = [1, 8, 8], strides = [1, 1, 1]} : vector<24x8x8xf32> to vector<1x8x8xf32>
    %202 = vector.shape_cast %201 : vector<1x8x8xf32> to vector<8x8xf32>
    %203 = vector.shape_cast %202 : vector<8x8xf32> to vector<1x8x8xf32>
    %204 = vector.broadcast %200 : vector<2x1x8xf32> to vector<2x8x8xf32>
    %205 = vector.broadcast %203 : vector<1x8x8xf32> to vector<2x8x8xf32>
    %206 = arith.mulf %204, %205 : vector<2x8x8xf32>
    %207 = arith.addf %197, %206 : vector<2x8x8xf32>
    %208 = vector.extract_strided_slice %10 {offsets = [0, 3, 0], sizes = [2, 1, 8], strides = [1, 1, 1]} : vector<2x8x8xf32> to vector<2x1x8xf32>
    %209 = vector.shape_cast %208 : vector<2x1x8xf32> to vector<2x8xf32>
    %210 = vector.shape_cast %209 : vector<2x8xf32> to vector<2x1x8xf32>
    %211 = vector.extract_strided_slice %12 {offsets = [19, 0, 0], sizes = [1, 8, 8], strides = [1, 1, 1]} : vector<24x8x8xf32> to vector<1x8x8xf32>
    %212 = vector.shape_cast %211 : vector<1x8x8xf32> to vector<8x8xf32>
    %213 = vector.shape_cast %212 : vector<8x8xf32> to vector<1x8x8xf32>
    %214 = vector.broadcast %210 : vector<2x1x8xf32> to vector<2x8x8xf32>
    %215 = vector.broadcast %213 : vector<1x8x8xf32> to vector<2x8x8xf32>
    %216 = arith.mulf %214, %215 : vector<2x8x8xf32>
    %217 = arith.addf %207, %216 : vector<2x8x8xf32>
    %218 = vector.extract_strided_slice %10 {offsets = [0, 4, 0], sizes = [2, 1, 8], strides = [1, 1, 1]} : vector<2x8x8xf32> to vector<2x1x8xf32>
    %219 = vector.shape_cast %218 : vector<2x1x8xf32> to vector<2x8xf32>
    %220 = vector.shape_cast %219 : vector<2x8xf32> to vector<2x1x8xf32>
    %221 = vector.extract_strided_slice %12 {offsets = [20, 0, 0], sizes = [1, 8, 8], strides = [1, 1, 1]} : vector<24x8x8xf32> to vector<1x8x8xf32>
    %222 = vector.shape_cast %221 : vector<1x8x8xf32> to vector<8x8xf32>
    %223 = vector.shape_cast %222 : vector<8x8xf32> to vector<1x8x8xf32>
    %224 = vector.broadcast %220 : vector<2x1x8xf32> to vector<2x8x8xf32>
    %225 = vector.broadcast %223 : vector<1x8x8xf32> to vector<2x8x8xf32>
    %226 = arith.mulf %224, %225 : vector<2x8x8xf32>
    %227 = arith.addf %217, %226 : vector<2x8x8xf32>
    %228 = vector.extract_strided_slice %10 {offsets = [0, 5, 0], sizes = [2, 1, 8], strides = [1, 1, 1]} : vector<2x8x8xf32> to vector<2x1x8xf32>
    %229 = vector.shape_cast %228 : vector<2x1x8xf32> to vector<2x8xf32>
    %230 = vector.shape_cast %229 : vector<2x8xf32> to vector<2x1x8xf32>
    %231 = vector.extract_strided_slice %12 {offsets = [21, 0, 0], sizes = [1, 8, 8], strides = [1, 1, 1]} : vector<24x8x8xf32> to vector<1x8x8xf32>
    %232 = vector.shape_cast %231 : vector<1x8x8xf32> to vector<8x8xf32>
    %233 = vector.shape_cast %232 : vector<8x8xf32> to vector<1x8x8xf32>
    %234 = vector.broadcast %230 : vector<2x1x8xf32> to vector<2x8x8xf32>
    %235 = vector.broadcast %233 : vector<1x8x8xf32> to vector<2x8x8xf32>
    %236 = arith.mulf %234, %235 : vector<2x8x8xf32>
    %237 = arith.addf %227, %236 : vector<2x8x8xf32>
    %238 = vector.extract_strided_slice %10 {offsets = [0, 6, 0], sizes = [2, 1, 8], strides = [1, 1, 1]} : vector<2x8x8xf32> to vector<2x1x8xf32>
    %239 = vector.shape_cast %238 : vector<2x1x8xf32> to vector<2x8xf32>
    %240 = vector.shape_cast %239 : vector<2x8xf32> to vector<2x1x8xf32>
    %241 = vector.extract_strided_slice %12 {offsets = [22, 0, 0], sizes = [1, 8, 8], strides = [1, 1, 1]} : vector<24x8x8xf32> to vector<1x8x8xf32>
    %242 = vector.shape_cast %241 : vector<1x8x8xf32> to vector<8x8xf32>
    %243 = vector.shape_cast %242 : vector<8x8xf32> to vector<1x8x8xf32>
    %244 = vector.broadcast %240 : vector<2x1x8xf32> to vector<2x8x8xf32>
    %245 = vector.broadcast %243 : vector<1x8x8xf32> to vector<2x8x8xf32>
    %246 = arith.mulf %244, %245 : vector<2x8x8xf32>
    %247 = arith.addf %237, %246 : vector<2x8x8xf32>
    %248 = vector.extract_strided_slice %10 {offsets = [0, 7, 0], sizes = [2, 1, 8], strides = [1, 1, 1]} : vector<2x8x8xf32> to vector<2x1x8xf32>
    %249 = vector.shape_cast %248 : vector<2x1x8xf32> to vector<2x8xf32>
    %250 = vector.shape_cast %249 : vector<2x8xf32> to vector<2x1x8xf32>
    %251 = vector.extract_strided_slice %12 {offsets = [23, 0, 0], sizes = [1, 8, 8], strides = [1, 1, 1]} : vector<24x8x8xf32> to vector<1x8x8xf32>
    %252 = vector.shape_cast %251 : vector<1x8x8xf32> to vector<8x8xf32>
    %253 = vector.shape_cast %252 : vector<8x8xf32> to vector<1x8x8xf32>
    %254 = vector.broadcast %250 : vector<2x1x8xf32> to vector<2x8x8xf32>
    %255 = vector.broadcast %253 : vector<1x8x8xf32> to vector<2x8x8xf32>
    %256 = arith.mulf %254, %255 : vector<2x8x8xf32>
    %257 = arith.addf %247, %256 : vector<2x8x8xf32>
    %258 = vector.shape_cast %257 : vector<2x8x8xf32> to vector<1x16x8xf32>
    %c0_14 = arith.constant 0 : index
    %c0_15 = arith.constant 0 : index
    %c0_16 = arith.constant 0 : index
    %259 = vector.load %arg6[%c0_14, %c0_15, %c0_16] : memref<1x16x8xf32, #tpu.memory_space<vmem>>, vector<1x16x8xf32>
    tpu.vector_store %arg6[%c0_14, %c0_15, %c0_16], %258 {strides = array<i32>} : memref<1x16x8xf32, #tpu.memory_space<vmem>>, vector<1x16x8xf32>,
    return
  }
  func.func @transform_0(%arg0: i32) -> (i32, i32) {
    %c0_i32 = arith.constant 0 : i32
    %c0_i32_0 = arith.constant 0 : i32
    %c0_i32_1 = arith.constant 0 : i32
    return %c0_i32, %c0_i32_0 : i32, i32
  }
  func.func @transform_1(%arg0: i32) -> (i32, i32, i32) {
    %c0_i32 = arith.constant 0 : i32
    %c0_i32_0 = arith.constant 0 : i32
    %c0_i32_1 = arith.constant 0 : i32
    return %arg0, %c0_i32, %c0_i32_0 : i32, i32, i32
  }
  func.func @transform_2(%arg0: i32) -> (i32, i32, i32) {
    %c0_i32 = arith.constant 0 : i32
    %c0_i32_0 = arith.constant 0 : i32
    %c0_i32_1 = arith.constant 0 : i32
    return %arg0, %c0_i32, %c0_i32_0 : i32, i32, i32
  }
  func.func @transform_3(%arg0: i32) -> (i32, i32, i32, i32) {
    %c0_i32 = arith.constant 0 : i32
    %c0_i32_0 = arith.constant 0 : i32
    %c0_i32_1 = arith.constant 0 : i32
    %c0_i32_2 = arith.constant 0 : i32
    return %arg0, %c0_i32, %c0_i32_0, %c0_i32_1 : i32, i32, i32, i32
  }
  func.func @transform_4(%arg0: i32) -> (i32, i32, i32) {
    %c0_i32 = arith.constant 0 : i32
    %c0_i32_0 = arith.constant 0 : i32
    %c0_i32_1 = arith.constant 0 : i32
    return %arg0, %c0_i32, %c0_i32_0 : i32, i32, i32
  }
  func.func @transform_5(%arg0: i32) -> (i32, i32, i32) {
    %c0_i32 = arith.constant 0 : i32
    %c0_i32_0 = arith.constant 0 : i32
    %c0_i32_1 = arith.constant 0 : i32
    return %arg0, %c0_i32, %c0_i32_0 : i32, i32, i32
  }
}

</mosaic_0001>

<bundles_post_ra>
// kernel: tpu_custom_call.1
= control target key start
LH: loop header
LB: loop body
LE: loop exit
PB: predicated region body
PF: predicated region fallthrough
CT: control target
= control target key end

     0   :  { %s895_s18 = smov 0   ;;  %s1049_s0 = inlined_call_operand.vmem [shape: f32[16,16], index: 0, kind: input, shape index: {}]   ;;  %s1050_s1 = inlined_call_operand.vmem [shape: f32[2,16,8], index: 1, kind: input, shape index: {}]   ;;  %s1051_s2 = inlined_call_operand.vmem [shape: f32[2,16,16], index: 2, kind: input, shape index: {}]   ;;  %s1052_s3 = inlined_call_operand.vmem [shape: f32[2,24,8,8], index: 3, kind: input, shape index: {}]   ;;  %s1053_s4 = inlined_call_operand.vmem [shape: f32[2,8,8], index: 4, kind: input, shape index: {}]   ;;  %s1054_s5 = inlined_call_operand.vmem [shape: f32[2,16,8], index: 5, kind: output, shape index: {}]  }
   0x1 LB: > { %s809_s19 = sadd.s32 4294967295, %s861_s18   ;;  %p813_p0 = scmp.ge.s32.totalorder %s861_s18, 1  ;;  %s861_s18 = sphi %s895_s18, %s15_s18  }
   0x2   : > { %p216_p1 = scmp.lt.s32.totalorder %s861_s18, 3 }
   0x4   : > { %p217_p2 = pnand %p813_p0, %p216_p1 }
   0x5   : > { %p258_p3 = scmp.lt.s32.totalorder (!%p217_p2), %s809_s19, 1  ;;  %v282_v0 = vld [vmem:[%s1049_s0] sm:$0xff] (!%p217_p2)  ;;  %vm286_vm0 = vcmask (!%p217_p2), 130048   ;;  %s863_s30 = smov (!%p217_p2), 8   ;;  %v283_v8 = vld [vmem:[%s1049_s0 + $0x8] sm:$0xff] (!%p217_p2)  ;;  %v395_v13 = vlaneseq (!%p217_p2)  ;;  %vm715_vm1 = vcmask (!%p217_p2), 64512  }
   0x6   : > { %220 = sbr.rel (%p217_p2) target bundleno = 386 (0x182), region = 40  ;;  %837 = vmatprep.mubr.msk.f32.mxu0 (!%p217_p2), %vm286_vm0, %v282_v0  ;;  %s864_s15 = smov (!%p217_p2), 120  }
   0x7   : > { %v396_v14 = vshrl.u32 (!%p217_p2), %v395_v13, 7 }
   0x9   : > { %v938_v15 = vsub.s32 (!%p217_p2), 0, %v396_v14  ;;  %v945_v18 = vsub.s32 (!%p217_p2), 1, %v396_v14  ;;  %v955_v22 = vsub.s32 (!%p217_p2), 2, %v396_v14  ;;  %v962_v29 = vsub.s32 (!%p217_p2), 3, %v396_v14 }
   0xa   : > { %v969_v37 = vsub.s32 (!%p217_p2), 4, %v396_v14  ;;  %v976_v45 = vsub.s32 (!%p217_p2), 5, %v396_v14  ;;  %v983_v53 = vsub.s32 (!%p217_p2), 6, %v396_v14  ;;  %v990_v61 = vsub.s32 (!%p217_p2), 7, %v396_v14 }
   0xd   : > { %s1056_s19 = smov (!%p258_p3, %s809_s19), 1 }
   0xe   : > { %s910_s22 = sshll.u32 %s1056_s19, 4  ;;  %s844_s23 = smul.u32 192, %s1056_s19 }
   0xf   : > { %s267_s26 = scalar_lea.vmem %s1051_s2, %s910_s22  ;;  %s262_s10 = scalar_lea.vmem %s1050_s1, %s910_s22 }
  0x10   : > { %s920_s29 = scalar_lea.vmem %s1052_s3, %s844_s23  ;;  %v284_v1 = vld [vmem:[%s267_s26] sm:$0xff]  ;;  %v285_v2 = vld [vmem:[%s267_s26 + $0x8] sm:$0xff]  ;;  %s819_s11 = sshll.u32 %s1056_s19, 3 }
  0x11   : > { %v840_v3 = vpack.c.bf16 %v285_v2, %v284_v1  ;;  %v388_v4 = vld [vmem:[%s920_s29 + $0x90] sm:$0xff]  ;;  %v386_v5 = vld [vmem:[%s920_s29 + $0x80] sm:$0xff]  ;;  %v389_v6 = vld [vmem:[%s920_s29 + $0x98] sm:$0xff]  ;;  %s276_s14 = scalar_lea.vmem %s1053_s4, %s819_s11  ;;  %s281_s19 = scalar_lea.vmem %s1054_s5, %s910_s22 }
  0x12   : > { %620 = vrot.lane.b32.xlu1 %v388_v4, %s863_s30  ;;  %588 = vrot.lane.b32.xlu0 %v386_v5, %s863_s30  ;;  %v387_v7 = vld [vmem:[%s920_s29 + $0x88] sm:$0xff]  ;;  %v390_v10 = vld [vmem:[%s920_s29 + $0xa0] sm:$0xff] }
  0x13   : > { %841 = vmatprep.subr.bf16.mxu0 %v840_v3  ;;  %v391_v9 = vld [vmem:[%s920_s29 + $0xa8] sm:$0xff]  ;;  %v393_v11 = vld [vmem:[%s920_s29 + $0xb8] sm:$0xff]  ;;  %v392_v12 = vld [vmem:[%s920_s29 + $0xb0] sm:$0xff] }
  0x14   : > { %843 = vmatpush3.bf16.msra.mxu0 %v840_v3  ;;  %v940_v16 = vld [vmem:[%s262_s10 + $0x8] sm:$0xff]  ;;  %v942_v17 = vld [vmem:[%s262_s10] sm:$0xff]  ;;  %v372_v33 = vld [vmem:[%s920_s29 + $0x10] sm:$0xff] }
  0x15   : > { %v402_v19 = vrot.slane %v940_v16, %v938_v15  ;;  %v370_v20 = vld [vmem:[%s920_s29] sm:$0xff]  ;;  %v398_v21 = vrot.slane %v942_v17, %v938_v15  ;;  %v414_v24 = vrot.slane %v940_v16, %v945_v18  ;;  %v371_v26 = vld [vmem:[%s920_s29 + $0x8] sm:$0xff]  ;;  %v410_v28 = vrot.slane %v942_v17, %v945_v18  ;;  %v373_v41 = vld [vmem:[%s920_s29 + $0x18] sm:$0xff] }
  0x16   : > { %636 = vrot.lane.b32.xlu1 %v389_v6, %s863_s30  ;;  %604 = vrot.lane.b32.xlu0 %v387_v7, %s863_s30  ;;  %v394_v25 = vld [vmem:[%s276_s14] sm:$0xff]  ;;  %v426_v32 = vrot.slane %v940_v16, %v955_v22  ;;  %v422_v36 = vrot.slane %v942_v17, %v955_v22  ;;  %v438_v40 = vrot.slane %v940_v16, %v962_v29  ;;  %v375_v57 = vld [vmem:[%s920_s29 + $0x28] sm:$0xff] }
  0x17   : > { %838 = vmatmul.mubr.msk.f32.vlgmr.msra.gmra.mrb[0].mxu0 %vm286_vm0, %v283_v8  ;;  %v404_v23 = vmul.f32 %v402_v19, %v370_v20  ;;  %v403_v27 = vmul.f32 %v398_v21, %v370_v20  ;;  %v416_v31 = vmul.f32 %v414_v24, %v371_v26  ;;  %v415_v35 = vmul.f32 %v410_v28, %v371_v26  ;;  %v374_v49 = vld [vmem:[%s920_s29 + $0x20] sm:$0xff]  ;;  %v376_v1 = vld [vmem:[%s920_s29 + $0x30] sm:$0xff]  ;;  %v377_v8 = vld [vmem:[%s920_s29 + $0x38] sm:$0xff] }
  0x18   : > { %v428_v39 = vmul.f32 %v426_v32, %v372_v33  ;;  %v427_v43 = vmul.f32 %v422_v36, %v372_v33  ;;  %v434_v44 = vrot.slane %v942_v17, %v962_v29  ;;  %v440_v47 = vmul.f32 %v438_v40, %v373_v41  ;;  %v378_v24 = vld [vmem:[%s920_s29 + $0x40] sm:$0xff]  ;;  %v379_v28 = vld [vmem:[%s920_s29 + $0x48] sm:$0xff] }
  0x19   : > { %v406_v30 = vadd.f32 %v404_v23, %v394_v25  ;;  %v405_v34 = vadd.f32 %v403_v27, %v394_v25  ;;  %v450_v48 = vrot.slane %v940_v16, %v969_v37  ;;  %v446_v52 = vrot.slane %v942_v17, %v969_v37 }
  0x1a   : > { %668 = vrot.lane.b32.xlu1 %v391_v9, %s863_s30  ;;  %652 = vrot.lane.b32.xlu0 %v390_v10, %s863_s30  ;;  %v439_v51 = vmul.f32 %v434_v44, %v373_v41  ;;  %v462_v56 = vrot.slane %v940_v16, %v976_v45  ;;  %v458_v60 = vrot.slane %v942_v17, %v976_v45  ;;  %v381_v44 = vld [vmem:[%s920_s29 + $0x58] sm:$0xff] }
  0x1b   : > { %v418_v38 = vadd.f32 %v416_v31, %v406_v30  ;;  %v417_v42 = vadd.f32 %v415_v35, %v405_v34  ;;  %v452_v55 = vmul.f32 %v450_v48, %v374_v49  ;;  %v451_v59 = vmul.f32 %v446_v52, %v374_v49 }
  0x1c   : > { %v464_v63 = vmul.f32 %v462_v56, %v375_v57  ;;  %v474_v0 = vrot.slane %v940_v16, %v983_v53  ;;  %v463_v3 = vmul.f32 %v458_v60, %v375_v57  ;;  %v470_v4 = vrot.slane %v942_v17, %v983_v53  ;;  %v382_v57 = vld [vmem:[%s920_s29 + $0x60] sm:$0xff] }
  0x1d   : > { %v430_v46 = vadd.f32 %v428_v39, %v418_v38  ;;  %v429_v50 = vadd.f32 %v427_v43, %v417_v42  ;;  %v486_v7 = vrot.slane %v940_v16, %v990_v61  ;;  %v380_v38 = vld [vmem:[%s920_s29 + $0x50] sm:$0xff] }
  0x1e   : > { %700 = vrot.lane.b32.xlu1 %v393_v11, %s863_s30  ;;  %684 = vrot.lane.b32.xlu0 %v392_v12, %s863_s30  ;;  %v476_v6 = vmul.f32 %v474_v0, %v376_v1  ;;  %v475_v10 = vmul.f32 %v470_v4, %v376_v1  ;;  %v482_v11 = vrot.slane %v942_v17, %v990_v61  ;;  %v383_v0 = vld [vmem:[%s920_s29 + $0x68] sm:$0xff]  ;;  %v384_v4 = vld [vmem:[%s920_s29 + $0x70] sm:$0xff] }
  0x1f   : > { %v442_v54 = vadd.f32 %v440_v47, %v430_v46  ;;  %v441_v58 = vadd.f32 %v439_v51, %v429_v50  ;;  %v488_v13 = vmul.f32 %v486_v7, %v377_v8 }
  0x20   : > { %v487_v20 = vmul.f32 %v482_v11, %v377_v8 }
  0x21   : > { %v454_v62 = vadd.f32 %v452_v55, %v442_v54  ;;  %v453_v2 = vadd.f32 %v451_v59, %v441_v58 }
  0x23   : > { %v466_v5 = vadd.f32 %v464_v63, %v454_v62  ;;  %v465_v9 = vadd.f32 %v463_v3, %v453_v2 }
  0x25   : > { %v478_v12 = vadd.f32 %v476_v6, %v466_v5  ;;  %v477_v19 = vadd.f32 %v475_v10, %v465_v9 }
  0x27   : > { %v490_v26 = vadd.f32 %v488_v13, %v478_v12  ;;  %v489_v31 = vadd.f32 %v487_v20, %v477_v19 }
  0x84   : > { %v589_v14 = vpop.permute.xlu0 %588  ;;  %v621_v42 = vpop.permute.xlu1 %620 }
  0x88   : > { %v605_v33 = vpop.permute.xlu0 %604  ;;  %v637_v3 = vpop.permute.xlu1 %636 }
  0x8c   : > { %v653_v19 = vpop.permute.xlu0 %652 }
  0xea   : > { %v839_v21 = vpop.f32.mrb[0].mxu0 }
  0xeb   : > { %v359_v23 = vpop.f32.mrb[1].mxu0  ;;  %v498_v25 = vrot.slane %v839_v21, %v938_v15  ;;  %v510_v16 = vrot.slane %v839_v21, %v945_v18  ;;  %v534_v46 = vrot.slane %v839_v21, %v962_v29  ;;  %v546_v54 = vrot.slane %v839_v21, %v969_v37 }
  0xec   : > { %v494_v27 = vrot.slane %v359_v23, %v938_v15  ;;  %v506_v30 = vrot.slane %v359_v23, %v945_v18  ;;  %v522_v15 = vrot.slane %v839_v21, %v955_v22  ;;  %v518_v43 = vrot.slane %v359_v23, %v955_v22 }
  0xed   : > { %v592_v17 = vmul.f32 %v589_v14, %v498_v25  ;;  %v500_v32 = vmul.f32 %v498_v25, %v378_v24  ;;  %v512_v36 = vmul.f32 %v510_v16, %v379_v28  ;;  %v608_v40 = vmul.f32 %v605_v33, %v510_v16 }
  0xee   : > { %v591_v34 = vmul.f32 %v589_v14, %v494_v27  ;;  %v499_v35 = vmul.f32 %v494_v27, %v378_v24  ;;  %v511_v41 = vmul.f32 %v506_v30, %v379_v28  ;;  %v530_v47 = vrot.slane %v359_v23, %v962_v29  ;;  %v385_v14 = vld [vmem:[%s920_s29 + $0x78] sm:$0xff] }
  0xef   : > { %597 = vrot.lane.b32.xlu1 %v592_v17, %s864_s15  ;;  %v502_v39 = vadd.f32 %v500_v32, %v490_v26  ;;  %v524_v49 = vmul.f32 %v522_v15, %v380_v38  ;;  %v607_v50 = vmul.f32 %v605_v33, %v506_v30  ;;  %v523_v52 = vmul.f32 %v518_v43, %v380_v38  ;;  %v685_v33 = vpop.permute.xlu0 %684 }
  0xf0   : > { %595 = vrot.lane.b32.xlu0 %v591_v34, %s864_s15  ;;  %v501_v18 = vadd.f32 %v499_v35, %v489_v31  ;;  %v570_v55 = vrot.slane %v839_v21, %v983_v53  ;;  %v536_v22 = vmul.f32 %v534_v46, %v381_v44  ;;  %v624_v58 = vmul.f32 %v621_v42, %v522_v15  ;;  %v669_v31 = vpop.permute.xlu1 %668 }
  0xf1   : > { %v514_v48 = vadd.f32 %v512_v36, %v502_v39  ;;  %v535_v59 = vmul.f32 %v530_v47, %v381_v44  ;;  %v542_v60 = vrot.slane %v359_v23, %v969_v37  ;;  %v566_v62 = vrot.slane %v359_v23, %v983_v53 }
  0xf2   : > { %v513_v51 = vadd.f32 %v511_v41, %v501_v18  ;;  %v558_v1 = vrot.slane %v839_v21, %v976_v45  ;;  %v554_v2 = vrot.slane %v359_v23, %v976_v45  ;;  %v623_v5 = vmul.f32 %v621_v42, %v518_v43 }
  0xf3   : > { %613 = vrot.lane.b32.xlu1 %v608_v40, %s864_s15  ;;  %v526_v56 = vadd.f32 %v524_v49, %v514_v48  ;;  %v548_v7 = vmul.f32 %v546_v54, %v382_v57  ;;  %v547_v8 = vmul.f32 %v542_v60, %v382_v57  ;;  %v578_v9 = vrot.slane %v359_v23, %v990_v61 }
  0xf4   : > { %611 = vrot.lane.b32.xlu0 %v607_v50, %s864_s15  ;;  %v525_v29 = vadd.f32 %v523_v52, %v513_v51  ;;  %v582_v37 = vrot.slane %v839_v21, %v990_v61  ;;  %v640_v53 = vmul.f32 %v637_v3, %v534_v46  ;;  %v560_v10 = vmul.f32 %v558_v1, %v383_v0  ;;  %v701_v36 = vpop.permute.xlu1 %700 }
  0xf5   : > { %v538_v63 = vadd.f32 %v536_v22, %v526_v56  ;;  %v559_v11 = vmul.f32 %v554_v2, %v383_v0  ;;  %v572_v13 = vmul.f32 %v570_v55, %v384_v4  ;;  %v571_v20 = vmul.f32 %v566_v62, %v384_v4 }
  0xf6   : > { %v537_v6 = vadd.f32 %v535_v59, %v525_v29  ;;  %v639_v24 = vmul.f32 %v637_v3, %v530_v47  ;;  %v656_v26 = vmul.f32 %v653_v19, %v546_v54  ;;  %v584_v61 = vmul.f32 %v582_v37, %v385_v14 }
  0xf7   : > { %629 = vrot.lane.b32.xlu1 %v624_v58, %s864_s15  ;;  %v550_v12 = vadd.f32 %v548_v7, %v538_v63  ;;  %v583_v23 = vmul.f32 %v578_v9, %v385_v14  ;;  %v655_v28 = vmul.f32 %v653_v19, %v542_v60  ;;  %v672_v32 = vmul.f32 %v669_v31, %v558_v1 }
  0xf8   : > { %627 = vrot.lane.b32.xlu0 %v623_v5, %s864_s15  ;;  %v549_v45 = vadd.f32 %v547_v8, %v537_v6  ;;  %v671_v34 = vmul.f32 %v669_v31, %v554_v2  ;;  %v688_v35 = vmul.f32 %v685_v33, %v570_v55  ;;  %v687_v38 = vmul.f32 %v685_v33, %v566_v62 }
  0xf9   : > { %v562_v25 = vadd.f32 %v560_v10, %v550_v12  ;;  %v704_v39 = vmul.f32 %v701_v36, %v582_v37  ;;  %v703_v40 = vmul.f32 %v701_v36, %v578_v9 }
  0xfa   : > { %v561_v16 = vadd.f32 %v559_v11, %v549_v45 }
  0xfb   : > { %645 = vrot.lane.b32.xlu1 %v640_v53, %s864_s15  ;;  %v574_v21 = vadd.f32 %v572_v13, %v562_v25 }
  0xfc   : > { %643 = vrot.lane.b32.xlu0 %v639_v24, %s864_s15  ;;  %v573_v27 = vadd.f32 %v571_v20, %v561_v16 }
  0xfd   : > { %v586_v30 = vadd.f32 %v584_v61, %v574_v21 }
  0xfe   : > { %v585_v17 = vadd.f32 %v583_v23, %v573_v27 }
  0xff   : > { %661 = vrot.lane.b32.xlu1 %v656_v26, %s864_s15 }
 0x100   : > { %659 = vrot.lane.b32.xlu0 %v655_v28, %s864_s15 }
 0x103   : > { %677 = vrot.lane.b32.xlu1 %v672_v32, %s864_s15 }
 0x104   : > { %675 = vrot.lane.b32.xlu0 %v671_v34, %s864_s15 }
 0x107   : > { %693 = vrot.lane.b32.xlu1 %v688_v35, %s864_s15 }
 0x108   : > { %691 = vrot.lane.b32.xlu0 %v687_v38, %s864_s15 }
 0x10b   : > { %709 = vrot.lane.b32.xlu1 %v704_v39, %s864_s15 }
 0x10c   : > { %707 = vrot.lane.b32.xlu0 %v703_v40, %s864_s15 }
 0x161   : > { %v598_v41 = vpop.permute.xlu1 %597 }
 0x162   : > { %v596_v15 = vpop.permute.xlu0 %595  ;;  %v602_v48 = vadd.f32 %v598_v41, %v586_v30 }
 0x163   : > { %v601_v50 = vadd.f32 %v596_v15, %v585_v17 }
 0x165   : > { %v614_v42 = vpop.permute.xlu1 %613 }
 0x166   : > { %v612_v18 = vpop.permute.xlu0 %611  ;;  %v618_v51 = vadd.f32 %v614_v42, %v602_v48 }
 0x167   : > { %v617_v54 = vadd.f32 %v612_v18, %v601_v50 }
 0x169   : > { %v630_v43 = vpop.permute.xlu1 %629 }
 0x16a   : > { %v628_v44 = vpop.permute.xlu0 %627  ;;  %v634_v55 = vadd.f32 %v630_v43, %v618_v51 }
 0x16b   : > { %v633_v22 = vadd.f32 %v628_v44, %v617_v54 }
 0x16d   : > { %v646_v46 = vpop.permute.xlu1 %645 }
 0x16e   : > { %v644_v47 = vpop.permute.xlu0 %643  ;;  %v650_v57 = vadd.f32 %v646_v46, %v634_v55 }
 0x16f   : > { %v649_v29 = vadd.f32 %v644_v47, %v633_v22 }
 0x171   : > { %v662_v49 = vpop.permute.xlu1 %661 }
 0x172   : > { %v660_v52 = vpop.permute.xlu0 %659  ;;  %v666_v59 = vadd.f32 %v662_v49, %v650_v57 }
 0x173   : > { %v665_v62 = vadd.f32 %v660_v52, %v649_v29 }
 0x175   : > { %v678_v56 = vpop.permute.xlu1 %677 }
 0x176   : > { %v676_v58 = vpop.permute.xlu0 %675  ;;  %v682_v63 = vadd.f32 %v678_v56, %v666_v59 }
 0x177   : > { %v681_v1 = vadd.f32 %v676_v58, %v665_v62 }
 0x179   : > { %v694_v60 = vpop.permute.xlu1 %693 }
 0x17a   : > { %v692_v0 = vpop.permute.xlu0 %691  ;;  %v698_v2 = vadd.f32 %v694_v60, %v682_v63 }
 0x17b   : > { %v697_v4 = vadd.f32 %v692_v0, %v681_v1 }
 0x17d   : > { %v710_v3 = vpop.permute.xlu1 %709 }
 0x17e   : > { %v714_v5 = vadd.f32 %v710_v3, %v698_v2  ;;  %v708_v6 = vpop.permute.xlu0 %707 }
 0x17f   : > { %v713_v7 = vadd.f32 %v708_v6, %v697_v4 }
 0x180   : > { %717 = vst.msk [vmem:[%s281_s19 + $0x8] sm:$0xff] %vm715_vm1, %v714_v5 }
 0x181   : > { %716 = vst.msk [vmem:[%s281_s19] sm:$0xff] %vm715_vm1, %v713_v7 }
 0x182 PF: > { %s15_s18 = sadd.s32 1, %s861_s18  }
 0x183   : > { %p12_p4 = scmp.ge.s32.totalorder %s15_s18, 4  }
 0x185   :  { %14 = sbr.rel (!%p12_p4) target bundleno = 1 (0x1), region = 79 }

</bundles_post_ra>
